<compile_context>
chip_gen: v7x
topology: tpu7x:2x2x1
jax: 0.10.0
libtpu: 0.0.40
codegen_flags: <defaults>
</compile_context>

<pallas_src>
import jax
import jax.numpy as jnp
from jax.experimental import pallas as pl
from jax.experimental.pallas import tpu as pltpu


def _unitary_kernel(w_ref, x_ref, o_ref):
    # w_ref: (C,)        f32, SMEM  -- conv weight, flattened
    # x_ref: (C, TILE_S) VMEM       -- one batch element, one spatial tile
    # o_ref: (1, TILE_S) VMEM       -- single-channel output tile
    num_channels = x_ref.shape[0]
    # Unrolled VPU weighted sum: acc += w[c] * x[c, :]   (f32 accumulation).
    acc = w_ref[0] * x_ref[0:1, :].astype(jnp.float32)
    for c in range(1, num_channels):
        acc = acc + w_ref[c] * x_ref[c : c + 1, :].astype(jnp.float32)
    o_ref[...] = acc.astype(o_ref.dtype)


def _round_up(x, m):
    return ((x + m - 1) // m) * m


def unitary_unit_forward(x, weight):
    """Forward pass of UnitaryUnit.

    x:      (N, C, D, H, W)  NCDHW (PyTorch Conv3d convention)
    weight: (1, C, 1, 1, 1)  Conv3d weight (out=1, kernel=1x1x1, no bias)
    returns (N, 1, D, H, W)
    """
    N, C, D, H, W = x.shape
    S = D * H * W
    x_flat = x.reshape(N, C, S)
    w1d = weight.reshape(C).astype(jnp.float32)

    # --- pick TILE_S: lane-dense (multiple of 128), sized for VMEM -------------
    # Double-buffered working set ~= 2 * (C*TILE_S + TILE_S) * 4 bytes. Budget it
    # well under the v7x scoped limit so one tile size works on every generation.
    vmem_budget = 12 * 1024 * 1024            # target for double-buffered blocks
    bytes_per_col = 4 * (C + 1)               # one f32 x column + one out column
    tile_budget = max(128, vmem_budget // (2 * bytes_per_col))
    s_ceil = _round_up(S, 128)
    tile_s = max(128, min((tile_budget // 128) * 128, s_ceil))

    s_pad = _round_up(S, tile_s)
    if s_pad != S:
        # Zero padding keeps the reduction exact; padded output lanes are sliced
        # off below, so downstream never sees them.
        x_flat = jnp.pad(x_flat, ((0, 0), (0, 0), (0, s_pad - S)))

    grid = (N, s_pad // tile_s)

    out_flat = pl.pallas_call(
        _unitary_kernel,
        out_shape=jax.ShapeDtypeStruct((N, 1, s_pad), x.dtype),
        grid_spec=pltpu.PrefetchScalarGridSpec(
            num_scalar_prefetch=0,
            grid=grid,
            in_specs=[
                # weight: whole (C,) array resident in SMEM, read as scalars
                pl.BlockSpec(memory_space=pltpu.MemorySpace.SMEM),
                # x: one batch element, one lane-dense spatial tile per step
                pl.BlockSpec((pl.Squeezed(), C, tile_s), lambda n, s: (n, 0, s)),
            ],
            out_specs=pl.BlockSpec(
                (pl.Squeezed(), 1, tile_s), lambda n, s: (n, 0, s)
            ),
        ),
        compiler_params=pltpu.CompilerParams(
            dimension_semantics=("parallel", "parallel"),
            vmem_limit_bytes=32 * 1024 * 1024,
        ),
    )(w1d, x_flat)

    return out_flat[:, :, :S].reshape(N, 1, D, H, W)


def _reference(x, weight):
    C = x.shape[1]
    return jnp.einsum("ncdhw,oc->nodhw", x, weight.reshape(1, C))


if __name__ == "__main__":
    key = jax.random.PRNGKey(0)
    kx, kw, kx2, kw2 = jax.random.split(key, 4)

    # --- case 1: small, Conv3d-consistent shapes (S a multiple of 128) --------
    N, C, D, H, W = 2, 4, 4, 8, 8
    x = jax.random.normal(kx, (N, C, D, H, W), dtype=jnp.float32)
    bound = 1.0 / jnp.sqrt(jnp.float32(C))
    weight = jax.random.uniform(
        kw, (1, C, 1, 1, 1), dtype=jnp.float32, minval=-bound, maxval=bound
    )

    out = jax.block_until_ready(unitary_unit_forward(x, weight))
    ref = _reference(x, weight)
    assert out.shape == (N, 1, D, H, W), out.shape
    assert jnp.allclose(out, ref, atol=1e-5, rtol=1e-5), "mismatch vs reference (case 1)"

    # --- case 2: ragged spatial size (S = 105, exercises the padding path) ----
    N2, C2, D2, H2, W2 = 2, 3, 3, 5, 7
    x2 = jax.random.normal(kx2, (N2, C2, D2, H2, W2), dtype=jnp.float32)
    bound2 = 1.0 / jnp.sqrt(jnp.float32(C2))
    weight2 = jax.random.uniform(
        kw2, (1, C2, 1, 1, 1), dtype=jnp.float32, minval=-bound2, maxval=bound2
    )

    out2 = jax.block_until_ready(unitary_unit_forward(x2, weight2))
    ref2 = _reference(x2, weight2)
    assert out2.shape == (N2, 1, D2, H2, W2), out2.shape
    assert jnp.allclose(out2, ref2, atol=1e-5, rtol=1e-5), "mismatch vs reference (case 2)"

    print("KERNEL_OK")
</pallas_src>

<mosaic_0001>
module attributes {stable_mosaic.version = 11 : i64} {
  func.func @_unitary_kernel(%arg0: i32, %arg1: i32, %arg2: memref<4xf32, #tpu.memory_space<smem>>, %arg3: memref<1x4x256xf32, #tpu.memory_space<vmem>>, %arg4: memref<1x1x256xf32, #tpu.memory_space<vmem>>) attributes {dimension_semantics = [#tpu.dimension_semantics<parallel>, #tpu.dimension_semantics<parallel>], iteration_bounds = array<i64: 2, 1>, scalar_prefetch = 0 : i64, scratch_operands = 0 : i64, tpu.core_type = #tpu.core_type<tc>, window_params = [{transform_indices = @transform_0, window_bounds = array<i64: 4>}, {transform_indices = @transform_1, window_bounds = array<i64: 1, 4, 256>}, {transform_indices = @transform_2, window_bounds = array<i64: 1, 1, 256>}]} {
    %c0 = arith.constant 0 : index
    %0 = memref.load %arg2[%c0] : memref<4xf32, #tpu.memory_space<smem>>
    %c0_0 = arith.constant 0 : index
    %c0_1 = arith.constant 0 : index
    %c0_2 = arith.constant 0 : index
    %1 = vector.load %arg3[%c0_0, %c0_1, %c0_2] : memref<1x4x256xf32, #tpu.memory_space<vmem>>, vector<1x1x256xf32>
    %2 = vector.shape_cast %1 : vector<1x1x256xf32> to vector<1x256xf32>
    %3 = vector.broadcast %0 : f32 to vector<1x256xf32>
    %4 = arith.mulf %3, %2 : vector<1x256xf32>
    %c1 = arith.constant 1 : index
    %5 = memref.load %arg2[%c1] : memref<4xf32, #tpu.memory_space<smem>>
    %c0_3 = arith.constant 0 : index
    %c1_4 = arith.constant 1 : index
    %c0_5 = arith.constant 0 : index
    %6 = vector.load %arg3[%c0_3, %c1_4, %c0_5] : memref<1x4x256xf32, #tpu.memory_space<vmem>>, vector<1x1x256xf32>
    %7 = vector.shape_cast %6 : vector<1x1x256xf32> to vector<1x256xf32>
    %8 = vector.broadcast %5 : f32 to vector<1x256xf32>
    %9 = arith.mulf %8, %7 : vector<1x256xf32>
    %10 = arith.addf %4, %9 : vector<1x256xf32>
    %c2 = arith.constant 2 : index
    %11 = memref.load %arg2[%c2] : memref<4xf32, #tpu.memory_space<smem>>
    %c0_6 = arith.constant 0 : index
    %c2_7 = arith.constant 2 : index
    %c0_8 = arith.constant 0 : index
    %12 = vector.load %arg3[%c0_6, %c2_7, %c0_8] : memref<1x4x256xf32, #tpu.memory_space<vmem>>, vector<1x1x256xf32>
    %13 = vector.shape_cast %12 : vector<1x1x256xf32> to vector<1x256xf32>
    %14 = vector.broadcast %11 : f32 to vector<1x256xf32>
    %15 = arith.mulf %14, %13 : vector<1x256xf32>
    %16 = arith.addf %10, %15 : vector<1x256xf32>
    %c3 = arith.constant 3 : index
    %17 = memref.load %arg2[%c3] : memref<4xf32, #tpu.memory_space<smem>>
    %c0_9 = arith.constant 0 : index
    %c3_10 = arith.constant 3 : index
    %c0_11 = arith.constant 0 : index
    %18 = vector.load %arg3[%c0_9, %c3_10, %c0_11] : memref<1x4x256xf32, #tpu.memory_space<vmem>>, vector<1x1x256xf32>
    %19 = vector.shape_cast %18 : vector<1x1x256xf32> to vector<1x256xf32>
    %20 = vector.broadcast %17 : f32 to vector<1x256xf32>
    %21 = arith.mulf %20, %19 : vector<1x256xf32>
    %22 = arith.addf %16, %21 : vector<1x256xf32>
    %c0_12 = arith.constant 0 : index
    %c0_13 = arith.constant 0 : index
    %c0_14 = arith.constant 0 : index
    %23 = vector.load %arg4[%c0_12, %c0_13, %c0_14] : memref<1x1x256xf32, #tpu.memory_space<vmem>>, vector<1x1x256xf32>
    %24 = vector.shape_cast %23 : vector<1x1x256xf32> to vector<1x256xf32>
    %25 = vector.shape_cast %22 : vector<1x256xf32> to vector<1x1x256xf32>
    tpu.vector_store %arg4[%c0_12, %c0_13, %c0_14], %25 {strides = array<i32>} : memref<1x1x256xf32, #tpu.memory_space<vmem>>, vector<1x1x256xf32>,
    return
  }
  func.func @transform_0(%arg0: i32, %arg1: i32) -> i32 {
    %c0_i32 = arith.constant 0 : i32
    %c0_i32_0 = arith.constant 0 : i32
    return %c0_i32 : i32
  }
  func.func @transform_1(%arg0: i32, %arg1: i32) -> (i32, i32, i32) {
    %c0_i32 = arith.constant 0 : i32
    %c0_i32_0 = arith.constant 0 : i32
    return %arg0, %c0_i32, %arg1 : i32, i32, i32
  }
  func.func @transform_2(%arg0: i32, %arg1: i32) -> (i32, i32, i32) {
    %c0_i32 = arith.constant 0 : i32
    %c0_i32_0 = arith.constant 0 : i32
    return %arg0, %c0_i32, %arg1 : i32, i32, i32
  }
}

</mosaic_0001>

<bundles_post_ra>
// kernel: tpu_custom_call.1
= control target key start
LH: loop header
LB: loop body
LE: loop exit
PB: predicated region body
PF: predicated region fallthrough
CT: control target
= control target key end

     0   :  { %7 = vsyncpa [#allocation5], 0  ;;  %s806_s0 = inlined_call_operand.hbm [shape: f32[4], index: 0, kind: input, shape index: {}]   ;;  %s807_s1 = inlined_call_operand.hbm [shape: f32[2,4,256], index: 1, kind: input, shape index: {}]   ;;  %s808_s2 = inlined_call_operand.hbm [shape: f32[2,1,256], index: 2, kind: output, shape index: {}]  }
   0x1   :  { %8 = vsyncpa [#allocation3], 0 }
   0x2   :  { %10 = vsyncpa [#allocation3 + $0x1], 0 }
   0x3   :  { %11 = vsyncpa [#allocation4], 0 }
   0x4   :  { %13 = vsyncpa [#allocation4 + $0x1], 0  ;;  %s579_s9 = smov 0   ;;  %s581_s10 = smov 0  }
   0x5   :  { %s583_s11 = smov 0   ;;  %s585_s12 = smov 0  }
   0x6   :  { %s587_s13 = smov 0   ;;  %s589_s14 = smov 0  }
   0x7 LB: > { %s332_s15 = sadd.s32 4294967295, %s559_s14   ;;  %s333_s16 = sadd.s32 4294967294, %s559_s14   ;;  %s559_s14 = sphi %s589_s14, %s19_s14   ;;  %s555_s13 = sphi %s587_s13, %s832_s13   ;;  %s551_s12 = sphi %s585_s12, %s831_s12   ;;  %s547_s11 = sphi %s583_s11, %s830_s11   ;;  %s543_s10 = sphi %s581_s10, %s829_s10   ;;  %s539_s9 = sphi %s579_s9, %s828_s9  }
   0x8   : > { %p74_p0 = scmp.ne.s32.totalorder %s543_s10, %s539_s9  ;;  %p613_p1 = scmp.eq.s32.totalorder %s332_s15, 0 }
   0x9   : > { %p617_p2 = scmp.eq.s32.totalorder %s332_s15, 1  ;;  %p106_p3 = scmp.eq.s32.totalorder %s333_s16, 1 }
   0xa   : > { %s813_s17 = scalar_select %p613_p1, 1, 0 }
   0xb   : > { %p623_p4 = por %p613_p1, %p74_p0  ;;  %p334_p5 = scmp.ge.s32.totalorder %s559_s14, 1 }
   0xc   : > { %p628_p6 = por %p106_p3, %p74_p0  ;;  %p113_p7 = scmp.lt.s32.totalorder %s559_s14, 3 }
   0xd   : > { %s815_s19 = scalar_select %p623_p4, 1, 0 }
   0xe   : > { %s816_s20 = scalar_select %p628_p6, 1, 0 }
   0xf   : > { %p633_p8 = pnand %p334_p5, %p113_p7  ;;  %s31_s22 = sadd.s32 1, %s555_s13 }
  0x10   : > { %p647_p12 = scmp.ge.s32.totalorder %s31_s22, 2  ;;  %s61_s25 = sadd.s32 1, %s547_s11 }
  0x11   : > { %p365_p10 = pneg %p633_p8  ;;  %p68_p13 = scmp.ne.s32.totalorder %s547_s11, %s543_s10 }
  0x12   : > { %p69_p0 = scmp.eq.s32.totalorder %s559_s14, 0  ;;  %s430_s28 = scalar_lea.hbm %s806_s0, 16 }
  0x13   : > { %p643_p11 = pnand %p365_p10, %p613_p1  ;;  %p431_p3 = scmp.ne.s32.totalorder %s806_s0, %s430_s28 }
  0x14   : > { %p437_p9 = scmp.lt.u32.totalorder %s430_s28, %s806_s0 }
  0x15   : > { %p432_p5 = pneg %p643_p11 }
  0x17   : > { %p433_p7 = pnand %p432_p5, %p431_p3 }
  0x19   : > { %p434_p10 = pneg %p433_p7 }
  0x1b   : > { %p439_p6 = pnand %p437_p9, %p434_p10 }
  0x1d   : > { %442 = shalt.err (!%p439_p6)
}
  0x1e   : > { %s561_s5 = smov [#allocation2]   ;;  %s834_s22 = smov (%p647_p12, %s31_s22), 0 }
  0x1f   : > { %368 = dma.hbm_to_smem (!%p643_p11), %s806_s0, 16, %s561_s5, [#allocation5]  }
  0x20   : > { %p678_p6 = por %p69_p0, %p68_p13  ;;  %p687_p9 = por %p617_p2, %p68_p13 }
  0x21   : > { %s56_s16 = ssub.s32 %s555_s13, %s834_s22  ;;  %p378_p3 = scmp.lt.s32.totalorder %s559_s14, 2 }
  0x22   : > { %s821_s15 = scalar_select %p687_p9, 1, 0 }
  0x23   : > { %p59_p5 = scmp.eq.s32.totalorder %s56_s16, 0  ;;  %s135_s23 = sand.u32 1, %s547_s11  }
  0x24   : > { %s337_s24 = sshll.u32 %s135_s23, 3  ;;  %s355_s27 = sshll.u32 %s555_s13, 7 }
  0x25   : > { %s696_s26 = scalar_select %p59_p5, %s547_s11, %s61_s25  }
  0x26   : > { %s702_s30 = scalar_lea.hbm %s807_s1, %s355_s27  ;;  %s139_s18 = scalar_lea.vmem [#allocation6], %s337_s24 }
  0x27   : > { %s149_s3 = sshll.u32 %s139_s18, 4  ;;  %p708_p2 = pnand %p378_p3, %p678_p6  ;;  %s704_s3 = int_to_ptr.vmem [resolvable:$true] %s149_s3 }
  0x28   : > { %s136_s25 = scalar_lea.sflag [#allocation3], %s135_s23  ;;  %s443_s5 = scalar_lea.hbm %s702_s30, 128 }
  0x29   : > { %p444_p11 = scmp.ne.s32.totalorder %s702_s30, %s443_s5  ;;  %p445_p12 = pneg %p708_p2 }
  0x2a   : > { %s448_s16 = scalar_lea.hbm %s807_s1, 256  ;;  %p449_p7 = scmp.lt.u32.totalorder %s702_s30, %s807_s1 }
  0x2b   : > { %p446_p13 = pnand %p445_p12, %p444_p11  ;;  %p450_p10 = scmp.lt.u32.totalorder %s448_s16, %s443_s5 }
  0x2c   : > { %p452_p3 = scmp.lt.u32.totalorder %s443_s5, %s702_s30 }
  0x2d   : > { %p447_p0 = pneg %p446_p13  ;;  %p451_p6 = por %p450_p10, %p449_p7 }
  0x2f   : > { %p453_p5 = por %p452_p3, %p451_p6 }
  0x31   : > { %p454_p9 = pnand %p453_p5, %p447_p0 }
  0x33   : > { %457 = shalt.err (!%p454_p9)
}
  0x34   : > { %s458_s23 = scalar_lea.vmem %s704_s3, 128  ;;  %s562_s27 = smov [#allocation6]  }
  0x35   : > { %p459_p11 = scmp.ne.s32.totalorder %s704_s3, %s458_s23  ;;  %s463_s28 = sshll.u32 %s562_s27, 4  ;;  %s464_s28 = int_to_ptr.vmem [resolvable:$false] %s463_s28 }
  0x36   : > { %s465_s29 = scalar_lea.vmem %s464_s28, 256  ;;  %p466_p1 = scmp.lt.s32.totalorder %s704_s3, %s464_s28 }
  0x37   : > { %p461_p13 = pnand %p459_p11, %p445_p12  ;;  %p467_p7 = scmp.lt.s32.totalorder %s465_s29, %s458_s23 }
  0x39   : > { %p462_p4 = pneg %p461_p13  ;;  %p468_p10 = por %p467_p7, %p466_p1 }
  0x3b   : > { %p469_p6 = pnand %p468_p10, %p462_p4 }
  0x3d   : > { %472 = shalt.err (!%p469_p6)
}
  0x3e   : > { %372 = dma.hbm_to_vmem [thread:$0]  (!%p708_p2), %s702_s30, 128, %s704_s3, %s136_s25  }
  0x3f   : > { %158 = sbr.rel (%p633_p8) target bundleno = 106 (0x6a), region = 28  ;;  %p823_p9 = scmp.ne.s32.totalorder (!%p633_p8), %s813_s17, 0 }
  0x46   : > { %526 = dma.done.wait (%p823_p9), [#allocation5], 16  }
  0x47   : > { %528 = vsyncadd (%p823_p9), [#allocation5], 4294967280  ;;  %s744_s18 = sand.u32 1, %s543_s10   ;;  %p824_p1 = scmp.ne.s32.totalorder %s815_s19, 0 }
  0x48   : > { %s342_s5 = sshll.u32 %s744_s18, 3  ;;  %s165_s4 = scalar_lea.sflag [#allocation3], %s744_s18 }
  0x49   : > { %s168_s6 = scalar_lea.vmem [#allocation6], %s342_s5 }
  0x4a   : > { %530 = dma.done.wait (%p824_p1), %s165_s4, 128  }
  0x4b   : > { %532 = vsyncadd (%p824_p1), %s165_s4, 4294967168 }
  0x4c   : > { %173 = sfence }
  0x4d   : > { %s192_s21 = sld [smem:[#allocation2]]  ;;  %s344_s30 = sld [smem:[#allocation2 + $0x1]]  ;;  %v193_v0 = vld [vmem:[%s168_s6] ss:$4 sm:$0x3]  ;;  %v214_v11 = vlaneseq }
  0x4e   : > { %s346_s17 = sld [smem:[#allocation2 + $0x2]]  ;;  %s348_s3 = sld [smem:[#allocation2 + $0x3]]  ;;  %v345_v1 = vld [vmem:[%s168_s6 + $0x1] ss:$4 sm:$0x3] }
  0x4f   : > { %s343_s25 = sshll.u32 %s744_s18, 1  ;;  %v347_v3 = vld [vmem:[%s168_s6 + $0x2] ss:$4 sm:$0x3]  ;;  %s356_s16 = sshll.u32 %s551_s12, 5  ;;  %vm216_vm0 = vcmp.lt.s32.totalorder %v214_v11, 256 }
  0x50   : > { %v349_v6 = vld [vmem:[%s168_s6 + $0x3] ss:$4 sm:$0x3]  ;;  %s189_s19 = scalar_lea.vmem [#allocation7], %s343_s25  ;;  %s759_s23 = scalar_lea.hbm %s808_s2, %s356_s16 }
  0x51   : > { %s236_s7 = sshll.u32 %s189_s19, 4  ;;  %s220_s27 = scalar_lea.sflag [#allocation4], %s744_s18  ;;  %s754_s7 = int_to_ptr.vmem [resolvable:$true] %s236_s7 }
  0x52   : > { %s473_s28 = scalar_lea.vmem %s754_s7, 32  ;;  %p825_p8 = scmp.ne.s32.totalorder %s821_s15, 0 }
  0x53   : > { %v194_v2 = vstv %s192_s21  ;;  %v199_v5 = vstv %s344_s30  ;;  %p474_p4 = scmp.ne.s32.totalorder %s754_s7, %s473_s28  ;;  %s563_s12 = smov [#allocation7]  }
  0x54   : > { %v195_v4 = vmul.f32 %v194_v2, %v193_v0  ;;  %v200_v7 = vmul.f32 %v345_v1, %v199_v5  ;;  %v205_v8 = vstv %s346_s17  ;;  %v211_v10 = vstv %s348_s3  ;;  %s477_s29 = sshll.u32 %s563_s12, 4  ;;  %s478_s29 = int_to_ptr.vmem [resolvable:$false] %s477_s29 }
  0x55   : > { %v206_v9 = vmul.f32 %v347_v3, %v205_v8  ;;  %v212_v13 = vmul.f32 %v349_v6, %v211_v10  ;;  %p475_p2 = pnand %p474_p4, %p825_p8  ;;  %s479_s5 = scalar_lea.vmem %s478_s29, 64 }
  0x56   : > { %v201_v12 = vadd.f32 %v200_v7, %v195_v4  ;;  %p480_p0 = scmp.lt.s32.totalorder %s754_s7, %s478_s29  ;;  %p481_p3 = scmp.lt.s32.totalorder %s479_s5, %s473_s28 }
  0x57   : > { %p476_p12 = pneg %p475_p2 }
  0x58   : > { %v207_v14 = vadd.f32 %v206_v9, %v201_v12  ;;  %p482_p5 = por %p481_p3, %p480_p0 }
  0x5a   : > { %v213_v15 = vadd.f32 %v212_v13, %v207_v14  ;;  %p483_p11 = pnand %p482_p5, %p476_p12 }
  0x5c   : > { %218 = vst.msk [vmem:[%s189_s19] sm:$0x3] %vm216_vm0, %v213_v15 }
  0x5d   : > { %486 = shalt.err (!%p483_p11)
}
  0x5e   : > { %s487_s18 = scalar_lea.hbm %s759_s23, 32  ;;  %s491_s21 = scalar_lea.hbm %s808_s2, 64 }
  0x5f   : > { %p488_p13 = scmp.ne.s32.totalorder %s759_s23, %s487_s18  ;;  %p492_p6 = scmp.lt.u32.totalorder %s759_s23, %s808_s2 }
  0x60   : > { %p493_p9 = scmp.lt.u32.totalorder %s491_s21, %s487_s18  ;;  %p495_p4 = scmp.lt.u32.totalorder %s487_s18, %s759_s23 }
  0x61   : > { %p489_p7 = pnand %p488_p13, %p825_p8 }
  0x62   : > { %p494_p1 = por %p493_p9, %p492_p6 }
  0x63   : > { %p490_p10 = pneg %p489_p7 }
  0x64   : > { %p496_p2 = por %p495_p4, %p494_p1 }
  0x66   : > { %p497_p12 = pnand %p496_p2, %p490_p10 }
  0x68   : > { %500 = shalt.err (!%p497_p12)
}
  0x69   : > { %363 = dma.vmem_to_hbm [thread:$0]  (%p825_p8), %s754_s7, 32, %s759_s23, %s220_s27  }
  0x6a PF: > { %s248_s3 = sand.u32 1, %s539_s9   ;;  %p826_p0 = scmp.ne.s32.totalorder %s816_s20, 0 }
  0x6b   : > { %p827_p3 = scmp.ge.s32.totalorder %s559_s14, 2  ;;  %s249_s25 = scalar_lea.sflag [#allocation4], %s248_s3 }
  0x6d   : > { %p374_p5 = pnand %p827_p3, %p826_p0 }
  0x6f   : > { %534 = dma.done.wait (!%p374_p5), %s249_s25, 32  }
  0x70   : > { %536 = vsyncadd (!%p374_p5), %s249_s25, 4294967264  ;;  %s19_s14 = sadd.s32 1, %s559_s14   ;;  %s828_s9 = smov %s543_s10 }
  0x71   : > { %p16_p11 = scmp.ge.s32.totalorder %s19_s14, 4   ;;  %s829_s10 = smov %s547_s11 }
  0x72   : > { %s830_s11 = smov %s696_s26  ;;  %s831_s12 = smov %s555_s13 }
  0x73   : > { %s832_s13 = smov %s834_s22  ;;  %18 = sbr.rel (!%p16_p11) target bundleno = 7 (0x7), region = 81 }
  0x7a   :  { %254 = vsyncpa [#allocation3], 1 }
  0x7b   :  { %256 = vsyncpa [#allocation3 + $0x1], 1 }
  0x7c   :  { %257 = vsyncpa [#allocation4], 1 }
  0x7d   :  { %259 = vsyncpa [#allocation4 + $0x1], 1 }
  0x7e   :  { %260 = vsyncpa [#allocation5], 1 }
  0x7f   :  { %262 = vsyncpa [#allocation5 + $0x1], 1 }

</bundles_post_ra>
